<compile_context>
chip_gen: v7x
topology: tpu7x:2x2x1
jax: 0.10.0
libtpu: 0.0.40
codegen_flags: <defaults>
</compile_context>

<pallas_src>
import functools

import jax
import jax.numpy as jnp
from jax.experimental import pallas as pl
from jax.experimental.pallas import tpu as pltpu

EPS = 1e-5

# Tiling knobs -------------------------------------------------------------
_TILE_ROWS_MAX = 1024                    # packed-row tile upper bound (sweep 256-1024)
_VMEM_BUDGET_BYTES = 16 * 1024 * 1024    # conservative working-set budget (v7x-safe)
_BYTES_PER_ELEM = 48                     # ~double-buffered in/out + f32 temps per slab elem
_VMEM_LIMIT_BYTES = 32 * 1024 * 1024     # scoped VMEM limit (safe on v5e/v6e/v7x)


def _round_up(a, b):
    return ((a + b - 1) // b) * b


def _cdiv(a, b):
    return -(-a // b)


def _groupnorm_kernel(x_ref, m_ref, mt_ref, w_ref, b_ref, o_ref, *, group_size):
    # x_ref : (T, Cp)  input slab (native dtype)
    # m_ref : (Cp, Gp) one-hot (block-diagonal) group membership, x dtype
    # mt_ref: (Gp, Cp) its transpose, f32 (broadcast-back matmul)
    # w_ref, b_ref: (1, Cp) per-channel affine, f32
    x = x_ref[...]
    t = x.shape[0]
    inv_gs = jnp.float32(1.0 / group_size)

    # One stacked MXU reduction: [x ; x*x] @ M -> [sum ; sum_sq]  (2T, Gp), f32 acc.
    stacked = jnp.concatenate([x, x * x], axis=0)
    sums = jnp.dot(stacked, m_ref[...], preferred_element_type=jnp.float32)
    gmean = sums[:t] * inv_gs                                   # (T, Gp)
    gmsq = sums[t:] * inv_gs
    gvar = jnp.maximum(gmsq - gmean * gmean, 0.0)               # single-pass variance
    rstd = jax.lax.rsqrt(gvar + jnp.float32(EPS))

    # One stacked broadcast-back: [mean ; rstd] @ M^T -> (2T, Cp).
    bcast = jnp.dot(jnp.concatenate([gmean, rstd], axis=0), mt_ref[...],
                    preferred_element_type=jnp.float32)
    mean_b = bcast[:t]
    rstd_b = bcast[t:]

    y = (x.astype(jnp.float32) - mean_b) * rstd_b * w_ref[...] + b_ref[...]
    o_ref[...] = y.astype(o_ref.dtype)


def _groupnorm_2d(x2d, weight, bias, num_groups):
    n, c = x2d.shape
    assert c % num_groups == 0, "num_channels must be divisible by num_groups"
    gs = c // num_groups

    # Lane packing factor: pack k rows per lane-row when C < 128.
    k = max(1, 128 // c) if c < 128 else 1
    c_p, g_p = k * c, k * num_groups

    # Row-tile sizing: as large as the VMEM budget allows, capped, and balanced
    # so the padded tail is minimal.
    tile_cap = max(8, (_VMEM_BUDGET_BYTES // _BYTES_PER_ELEM // c_p) // 8 * 8)
    tile_max = min(_TILE_ROWS_MAX, tile_cap)
    n_pack_min = _cdiv(n, k)                     # packed rows required
    num_tiles = _cdiv(n_pack_min, tile_max)
    tile_n = _round_up(_cdiv(n_pack_min, num_tiles), 8)
    n_pack = tile_n * num_tiles
    n_padded = n_pack * k

    xp = x2d
    if n_padded != n:
        # Zero rows: var=0 -> rstd = rsqrt(eps) (finite); sliced off below.
        xp = jnp.pad(xp, ((0, n_padded - n), (0, 0)))
    xp = xp.reshape(n_pack, c_p)

    # Block-diagonal membership: packed channel i belongs to packed group
    # (i // C) * G + (i % C) // group_size.
    idx = jnp.arange(c_p)
    grp = (idx // c) * num_groups + (idx % c) // gs
    m = jax.nn.one_hot(grp, g_p, dtype=xp.dtype)           # (Cp, Gp)
    m_t = jax.nn.one_hot(grp, g_p, dtype=jnp.float32).T    # (Gp, Cp)

    w = jnp.tile(weight.astype(jnp.float32), k).reshape(1, c_p)
    b = jnp.tile(bias.astype(jnp.float32), k).reshape(1, c_p)

    kernel = functools.partial(_groupnorm_kernel, group_size=gs)

    out = pl.pallas_call(
        kernel,
        out_shape=jax.ShapeDtypeStruct((n_pack, c_p), x2d.dtype),
        grid_spec=pltpu.PrefetchScalarGridSpec(
            num_scalar_prefetch=0,
            grid=(num_tiles,),
            in_specs=[
                pl.BlockSpec((tile_n, c_p), lambda i: (i, 0)),   # x rows (packed)
                pl.BlockSpec((c_p, g_p), lambda i: (0, 0)),      # membership M
                pl.BlockSpec((g_p, c_p), lambda i: (0, 0)),      # M^T
                pl.BlockSpec((1, c_p), lambda i: (0, 0)),        # weight
                pl.BlockSpec((1, c_p), lambda i: (0, 0)),        # bias
            ],
            out_specs=pl.BlockSpec((tile_n, c_p), lambda i: (i, 0)),
        ),
        compiler_params=pltpu.CompilerParams(
            dimension_semantics=("parallel",),
            vmem_limit_bytes=_VMEM_LIMIT_BYTES),
    )(xp, m, m_t, w, b)

    return out.reshape(n_padded, c)[:n]


def mygroupnorm_forward(x, weight, bias, num_groups):
    """Pallas equivalent of mygroupnorm.forward."""
    if x.ndim == 3:
        b, v, c = x.shape
        y = _groupnorm_2d(x.reshape(b * v, c), weight, bias, num_groups)
        return y.reshape(b, v, c)
    else:
        # 2-D (N, C) case.
        # TODO(synk): nn.GroupNorm also supports (N, C, *spatial); flatten
        # spatial dims in the wrapper if ever needed.
        return _groupnorm_2d(x, weight, bias, num_groups)


def _reference_groupnorm(x, weight, bias, num_groups):
    # pure-JAX reference matching torch.nn.GroupNorm on (N, C)
    orig_shape = x.shape
    if x.ndim == 3:
        b, v, c = x.shape
        x = x.reshape(b * v, c)
    n, c = x.shape
    gs = c // num_groups
    xg = x.reshape(n, num_groups, gs).astype(jnp.float32)
    mean = xg.mean(axis=-1, keepdims=True)
    var = ((xg - mean) ** 2).mean(axis=-1, keepdims=True)
    y = (xg - mean) * jax.lax.rsqrt(var + EPS)
    y = (y.reshape(n, c) * weight[None, :].astype(jnp.float32)
         + bias[None, :].astype(jnp.float32))
    return y.reshape(orig_shape).astype(x.dtype)


if __name__ == "__main__":
    num_groups = 4
    num_channels = 32
    b_, v_ = 2, 8   # 3-D input (b, v, c) path of mygroupnorm.forward

    key = jax.random.PRNGKey(0)
    kx, kw, kb, kx2 = jax.random.split(key, 4)
    x3 = jax.random.normal(kx, (b_, v_, num_channels), dtype=jnp.float32)

    # nn.GroupNorm defaults are weight=1, bias=0; perturb so the affine path
    # is actually exercised.
    weight = 1.0 + 0.1 * jax.random.normal(kw, (num_channels,), dtype=jnp.float32)
    bias = 0.1 * jax.random.normal(kb, (num_channels,), dtype=jnp.float32)

    out3 = jax.block_until_ready(mygroupnorm_forward(x3, weight, bias, num_groups))
    ref3 = _reference_groupnorm(x3, weight, bias, num_groups)
    assert out3.shape == x3.shape and out3.dtype == x3.dtype
    assert jnp.allclose(out3, ref3, atol=2e-5, rtol=2e-5), (
        float(jnp.max(jnp.abs(out3 - ref3))))

    # 2-D path with a row count that exercises the padded/sliced tail.
    x2 = jax.random.normal(kx2, (13, num_channels), dtype=jnp.float32)
    out2 = jax.block_until_ready(mygroupnorm_forward(x2, weight, bias, num_groups))
    ref2 = _reference_groupnorm(x2, weight, bias, num_groups)
    assert out2.shape == x2.shape and out2.dtype == x2.dtype
    assert jnp.allclose(out2, ref2, atol=2e-5, rtol=2e-5), (
        float(jnp.max(jnp.abs(out2 - ref2))))

    print("KERNEL_OK")
</pallas_src>

<mosaic_0001>
module attributes {stable_mosaic.version = 11 : i64} {
  func.func @_groupnorm_kernel(%arg0: i32, %arg1: memref<8x128xf32, #tpu.memory_space<vmem>>, %arg2: memref<128x16xf32, #tpu.memory_space<vmem>>, %arg3: memref<16x128xf32, #tpu.memory_space<vmem>>, %arg4: memref<1x128xf32, #tpu.memory_space<vmem>>, %arg5: memref<1x128xf32, #tpu.memory_space<vmem>>, %arg6: memref<8x128xf32, #tpu.memory_space<vmem>>) attributes {dimension_semantics = [#tpu.dimension_semantics<parallel>], iteration_bounds = array<i64: 1>, scalar_prefetch = 0 : i64, scratch_operands = 0 : i64, tpu.core_type = #tpu.core_type<tc>, window_params = [{transform_indices = @transform_0, window_bounds = array<i64: 8, 128>}, {pipeline_mode = #tpu.pipeline_mode<synchronous>, transform_indices = @transform_1, window_bounds = array<i64: 128, 16>}, {pipeline_mode = #tpu.pipeline_mode<synchronous>, transform_indices = @transform_2, window_bounds = array<i64: 16, 128>}, {pipeline_mode = #tpu.pipeline_mode<synchronous>, transform_indices = @transform_3, window_bounds = array<i64: 1, 128>}, {pipeline_mode = #tpu.pipeline_mode<synchronous>, transform_indices = @transform_4, window_bounds = array<i64: 1, 128>}, {transform_indices = @transform_5, window_bounds = array<i64: 8, 128>}]} {
    %c0 = arith.constant 0 : index
    %c0_0 = arith.constant 0 : index
    %0 = vector.load %arg1[%c0, %c0_0] : memref<8x128xf32, #tpu.memory_space<vmem>>, vector<8x128xf32>
    %1 = arith.mulf %0, %0 : vector<8x128xf32>
    %2 = tpu.concatenate %0, %1 in 0 : vector<8x128xf32>, vector<8x128xf32> -> vector<16x128xf32>
    %c0_1 = arith.constant 0 : index
    %c0_2 = arith.constant 0 : index
    %3 = vector.load %arg2[%c0_1, %c0_2] : memref<128x16xf32, #tpu.memory_space<vmem>>, vector<128x16xf32>
    %cst = arith.constant dense<0.000000e+00> : vector<16x16xf32>
    %4 = tpu.matmul %2, %3, %cst {dimension_numbers = #tpu.dot_dimension_numbers<[1], [0], [0], [1], [0, 0, 1, 1], [], []>} : vector<16x128xf32>, vector<128x16xf32>, vector<16x16xf32> -> vector<16x16xf32>
    %5 = vector.extract_strided_slice %4 {offsets = [0, 0], sizes = [8, 16], strides = [1, 1]} : vector<16x16xf32> to vector<8x16xf32>
    %cst_3 = arith.constant 1.250000e-01 : f32
    %6 = vector.broadcast %cst_3 : f32 to vector<8x16xf32>
    %7 = arith.mulf %5, %6 : vector<8x16xf32>
    %8 = vector.extract_strided_slice %4 {offsets = [8, 0], sizes = [8, 16], strides = [1, 1]} : vector<16x16xf32> to vector<8x16xf32>
    %cst_4 = arith.constant 1.250000e-01 : f32
    %9 = vector.broadcast %cst_4 : f32 to vector<8x16xf32>
    %10 = arith.mulf %8, %9 : vector<8x16xf32>
    %11 = arith.mulf %7, %7 : vector<8x16xf32>
    %12 = arith.subf %10, %11 : vector<8x16xf32>
    %cst_5 = arith.constant 0.000000e+00 : f32
    %13 = vector.broadcast %cst_5 : f32 to vector<8x16xf32>
    %14 = arith.maximumf %12, %13 : vector<8x16xf32>
    %cst_6 = arith.constant 9.99999974E-6 : f32
    %15 = vector.broadcast %cst_6 : f32 to vector<8x16xf32>
    %16 = arith.addf %14, %15 : vector<8x16xf32>
    %17 = math.rsqrt %16 : vector<8x16xf32>
    %18 = tpu.concatenate %7, %17 in 0 : vector<8x16xf32>, vector<8x16xf32> -> vector<16x16xf32>
    %c0_7 = arith.constant 0 : index
    %c0_8 = arith.constant 0 : index
    %19 = vector.load %arg3[%c0_7, %c0_8] : memref<16x128xf32, #tpu.memory_space<vmem>>, vector<16x128xf32>
    %cst_9 = arith.constant dense<0.000000e+00> : vector<16x128xf32>
    %20 = tpu.matmul %18, %19, %cst_9 {dimension_numbers = #tpu.dot_dimension_numbers<[1], [0], [0], [1], [0, 0, 1, 1], [], []>} : vector<16x16xf32>, vector<16x128xf32>, vector<16x128xf32> -> vector<16x128xf32>
    %21 = vector.extract_strided_slice %20 {offsets = [0, 0], sizes = [8, 128], strides = [1, 1]} : vector<16x128xf32> to vector<8x128xf32>
    %22 = vector.extract_strided_slice %20 {offsets = [8, 0], sizes = [8, 128], strides = [1, 1]} : vector<16x128xf32> to vector<8x128xf32>
    %23 = arith.subf %0, %21 : vector<8x128xf32>
    %24 = arith.mulf %23, %22 : vector<8x128xf32>
    %c0_10 = arith.constant 0 : index
    %c0_11 = arith.constant 0 : index
    %25 = vector.load %arg4[%c0_10, %c0_11] : memref<1x128xf32, #tpu.memory_space<vmem>>, vector<1x128xf32>
    %26 = vector.broadcast %25 : vector<1x128xf32> to vector<8x128xf32>
    %27 = arith.mulf %24, %26 : vector<8x128xf32>
    %c0_12 = arith.constant 0 : index
    %c0_13 = arith.constant 0 : index
    %28 = vector.load %arg5[%c0_12, %c0_13] : memref<1x128xf32, #tpu.memory_space<vmem>>, vector<1x128xf32>
    %29 = vector.broadcast %28 : vector<1x128xf32> to vector<8x128xf32>
    %30 = arith.addf %27, %29 : vector<8x128xf32>
    %c0_14 = arith.constant 0 : index
    %c0_15 = arith.constant 0 : index
    %31 = vector.load %arg6[%c0_14, %c0_15] : memref<8x128xf32, #tpu.memory_space<vmem>>, vector<8x128xf32>
    tpu.vector_store %arg6[%c0_14, %c0_15], %30 {strides = array<i32>} : memref<8x128xf32, #tpu.memory_space<vmem>>, vector<8x128xf32>,
    return
  }
  func.func @transform_0(%arg0: i32) -> (i32, i32) {
    %c0_i32 = arith.constant 0 : i32
    %c0_i32_0 = arith.constant 0 : i32
    return %arg0, %c0_i32 : i32, i32
  }
  func.func @transform_1(%arg0: i32) -> (i32, i32) {
    %c0_i32 = arith.constant 0 : i32
    %c0_i32_0 = arith.constant 0 : i32
    %c0_i32_1 = arith.constant 0 : i32
    return %c0_i32, %c0_i32_0 : i32, i32
  }
  func.func @transform_2(%arg0: i32) -> (i32, i32) {
    %c0_i32 = arith.constant 0 : i32
    %c0_i32_0 = arith.constant 0 : i32
    %c0_i32_1 = arith.constant 0 : i32
    return %c0_i32, %c0_i32_0 : i32, i32
  }
  func.func @transform_3(%arg0: i32) -> (i32, i32) {
    %c0_i32 = arith.constant 0 : i32
    %c0_i32_0 = arith.constant 0 : i32
    %c0_i32_1 = arith.constant 0 : i32
    return %c0_i32, %c0_i32_0 : i32, i32
  }
  func.func @transform_4(%arg0: i32) -> (i32, i32) {
    %c0_i32 = arith.constant 0 : i32
    %c0_i32_0 = arith.constant 0 : i32
    %c0_i32_1 = arith.constant 0 : i32
    return %c0_i32, %c0_i32_0 : i32, i32
  }
  func.func @transform_5(%arg0: i32) -> (i32, i32) {
    %c0_i32 = arith.constant 0 : i32
    %c0_i32_0 = arith.constant 0 : i32
    return %arg0, %c0_i32 : i32, i32
  }
}

</mosaic_0001>

<bundles_post_ra>
// kernel: tpu_custom_call.1
= control target key start
LH: loop header
LB: loop body
LE: loop exit
PB: predicated region body
PF: predicated region fallthrough
CT: control target
= control target key end

     0   :  { %s475_s0 = inlined_call_operand.vmem [shape: f32[8,128], index: 0, kind: input, shape index: {}]   ;;  %s476_s1 = inlined_call_operand.vmem [shape: f32[128,16], index: 1, kind: input, shape index: {}]   ;;  %s477_s2 = inlined_call_operand.vmem [shape: f32[16,128], index: 2, kind: input, shape index: {}]   ;;  %s478_s3 = inlined_call_operand.vmem [shape: f32[1,128], index: 3, kind: input, shape index: {}]   ;;  %s479_s4 = inlined_call_operand.vmem [shape: f32[1,128], index: 4, kind: input, shape index: {}]   ;;  %s480_s5 = inlined_call_operand.hbm [shape: f32[8,128], index: 5, kind: output, shape index: {}]  }
   0x1   :  { %v23_v0 = vld [vmem:[%s476_s1] sm:$0xff]  ;;  %v24_v1 = vld [vmem:[%s476_s1 + $0x8] sm:$0xff]  ;;  %v25_v2 = vld [vmem:[%s476_s1 + $0x10] sm:$0xff] }
   0x2   :  { %v306_v3 = vpack.c.bf16 %v24_v1, %v23_v0  ;;  %v26_v4 = vld [vmem:[%s476_s1 + $0x18] sm:$0xff]  ;;  %v27_v6 = vld [vmem:[%s476_s1 + $0x20] sm:$0xff]  ;;  %v28_v7 = vld [vmem:[%s476_s1 + $0x28] sm:$0xff] }
   0x3   :  { %v310_v5 = vpack.c.bf16 %v26_v4, %v25_v2  ;;  %v314_v8 = vpack.c.bf16 %v28_v7, %v27_v6  ;;  %v21_v9 = vld [vmem:[%s475_s0] sm:$0xff] }
   0x4   :  { %307 = vmatprep.subr.bf16.mxu0 %v306_v3 }
   0x5   :  { %309 = vmatpush3.bf16.msra.mxu0 %v306_v3 }
   0x6   :  { %311 = vmatprep.subr.bf16.mxu0 %v310_v5 }
   0x7   :  { %10 = vsyncpa [#allocation3], 0  ;;  %v29_v10 = vld [vmem:[%s476_s1 + $0x30] sm:$0xff]  ;;  %v30_v11 = vld [vmem:[%s476_s1 + $0x38] sm:$0xff]  ;;  %296 = vmatprep.mubr.f32.mxu0 %v21_v9  ;;  %v22_v25 = vmul.f32 %v21_v9, %v21_v9  ;;  %vm123_vm0 = vcmask 130048   ;;  %s369_s7 = smov [#allocation2]  }
   0x8   :  { %v318_v12 = vpack.c.bf16 %v30_v11, %v29_v10  ;;  %v31_v13 = vld [vmem:[%s476_s1 + $0x40] sm:$0xff]  ;;  %v32_v14 = vld [vmem:[%s476_s1 + $0x48] sm:$0xff]  ;;  %v33_v16 = vld [vmem:[%s476_s1 + $0x50] sm:$0xff]  ;;  %s230_s8 = sshll.u32 %s369_s7, 4  ;;  %s231_s8 = int_to_ptr.vmem [resolvable:$true] %s230_s8 }
   0x9   :  { %313 = vmatpush3.bf16.msra.mxu0 %v310_v5  ;;  %v322_v15 = vpack.c.bf16 %v32_v14, %v31_v13  ;;  %v34_v17 = vld [vmem:[%s476_s1 + $0x58] sm:$0xff]  ;;  %v35_v19 = vld [vmem:[%s476_s1 + $0x60] sm:$0xff]  ;;  %v36_v20 = vld [vmem:[%s476_s1 + $0x68] sm:$0xff]  ;;  %s345_s9 = scalar_lea.vmem %s231_s8, 128  ;;  %p350_p1 = scmp.lt.s32.totalorder %s231_s8, %s231_s8 }
   0xa   :  { %315 = vmatprep.subr.bf16.mxu0 %v314_v8  ;;  %v326_v18 = vpack.c.bf16 %v34_v17, %v33_v16  ;;  %v330_v21 = vpack.c.bf16 %v36_v20, %v35_v19  ;;  %v37_v22 = vld [vmem:[%s476_s1 + $0x70] sm:$0xff]  ;;  %v38_v23 = vld [vmem:[%s476_s1 + $0x78] sm:$0xff]  ;;  %v121_v26 = vld [vmem:[%s477_s2] sm:$0xff]  ;;  %p346_p0 = scmp.ne.s32.totalorder %s231_s8, %s345_s9  ;;  %p351_p2 = scmp.lt.s32.totalorder %s345_s9, %s345_s9 }
   0xb   :  { %v334_v24 = vpack.c.bf16 %v38_v23, %v37_v22  ;;  %v122_v27 = vld [vmem:[%s477_s2 + $0x8] sm:$0xff]  ;;  %v240_v41 = vld [vmem:[%s478_s3] ss:$0 sm:$0xff] }
   0xc   :  { %v338_v28 = vpack.c.bf16 %v122_v27, %v121_v26  ;;  %v241_v43 = vld [vmem:[%s479_s4] ss:$0 sm:$0xff]  ;;  %p352_p3 = por %p351_p2, %p350_p1 }
   0xd   :  { %317 = vmatpush3.bf16.msra.mxu0 %v314_v8 }
   0xe   :  { %319 = vmatprep.subr.bf16.mxu0 %v318_v12  ;;  %339 = vmatprep.subr.bf16.mxu1 %v338_v28  ;;  %p353_p4 = pnand %p352_p3, %p346_p0 }
   0xf   :  { %341 = vmatpush3.bf16.msra.mxu1 %v338_v28 }
  0x11   :  { %321 = vmatpush3.bf16.msra.mxu0 %v318_v12 }
  0x12   :  { %323 = vmatprep.subr.bf16.mxu0 %v322_v15 }
  0x15   :  { %325 = vmatpush3.bf16.msra.mxu0 %v322_v15 }
  0x16   :  { %327 = vmatprep.subr.bf16.mxu0 %v326_v18 }
  0x19   :  { %329 = vmatpush3.bf16.msra.mxu0 %v326_v18 }
  0x1a   :  { %331 = vmatprep.subr.bf16.mxu0 %v330_v21 }
  0x1d   :  { %333 = vmatpush3.bf16.msra.mxu0 %v330_v21 }
  0x1e   :  { %335 = vmatprep.subr.bf16.mxu0 %v334_v24 }
  0x21   :  { %337 = vmatpush3.bf16.msra.mxu0 %v334_v24 }
  0x24   :  { %297 = vmatmul.mubr.f32.vlgmr.msra.gmra.mrb[0].mxu0 %v22_v25 }
  0xf7   :  { %v298_v29 = vpop.f32.mrb[0].mxu0 }
  0xf8   :  { %v105_v30 = vpop.f32.mrb[1].mxu0  ;;  %v115_v32 = vmul.f32 0.125, %v298_v29 }
  0xf9   :  { %v114_v31 = vmul.f32 0.125, %v105_v30 }
  0xfb   :  { %v116_v33 = vmul.f32 %v114_v31, %v114_v31  ;;  %303 = vmatprep.mubr.msk.f32.mxu1 %vm123_vm0, %v114_v31 }
  0xfd   :  { %v117_v34 = vsub.f32 %v115_v32, %v116_v33 }
  0xff   :  { %v118_v35 = vmax.f32 %v117_v34, 0.0 }
 0x101   :  { %v119_v36 = vadd.f32 1e-05, %v118_v35 }
 0x103   :  { %343 = vrsqrt.f32 %v119_v36 }
 0x10d   :  { %v344_v37 = vpop.eup %343 }
 0x10e   :  { %304 = vmatmul.mubr.msk.f32.vlgmr.msra.gmra.mrb[0].mxu1 %vm123_vm0, %v344_v37 }
 0x1e1   :  { %v305_v38 = vpop.f32.mrb[0].mxu1 }
 0x1e2   :  { %v196_v39 = vpop.f32.mrb[1].mxu1 }
 0x1e3   :  { %v205_v40 = vsub.f32 %v21_v9, %v196_v39 }
 0x1e5   :  { %v206_v42 = vmul.f32 %v305_v38, %v205_v40 }
 0x1e7   :  { %v214_v44 = vmul.f32 %v240_v41, %v206_v42 }
 0x1e9   :  { %v222_v45 = vadd.f32 %v241_v43, %v214_v44 }
 0x1eb   :  { %223 = vst [vmem:[#allocation2] sm:$0xff] %v222_v45 }
 0x1ec   :  { %356 = shalt.err (!%p353_p4)
}
 0x1ed   :  { %s357_s11 = scalar_lea.hbm %s480_s5, 128 }
 0x1ee   :  { %p358_p5 = scmp.ne.s32.totalorder %s480_s5, %s357_s11  ;;  %p361_p6 = scmp.lt.u32.totalorder %s357_s11, %s480_s5 }
 0x1f0   :  { %p363_p7 = pnand %p361_p6, %p358_p5 }
 0x1f2   :  { %366 = shalt.err (!%p363_p7)
}
 0x1f3   :  { %233 = dma.vmem_to_hbm [thread:$0]  %s231_s8, 128, %s480_s5, [#allocation3]  }
 0x1f4   :  { %367 = dma.done.wait [#allocation3], 128  }
 0x1f5   :  { %368 = vsyncadd [#allocation3], 4294967168 }
 0x1f6   :  { %237 = vsyncpa [#allocation3], 1 }

</bundles_post_ra>
